<compile_context>
chip_gen: v5e
topology: v5e:2x2
jax: 0.10.0
libtpu: 0.0.40
codegen_flags: <defaults>
</compile_context>

<pallas_src>
import functools

import jax
import jax.numpy as jnp
from jax.experimental import pallas as pl
from jax.experimental.pallas import tpu as pltpu

LANE = 128  # TPU vreg lane width; pack & compute at full lane density.


def _round_up(x: int, m: int) -> int:
    return (x + m - 1) // m * m


def _param_offsets(state_size: int):
    """Row offsets of each segment inside the packed (rows, LANE) buffer."""
    w1_off = 0
    b1_off = state_size                     # single row right after w1
    w2_off = _round_up(state_size + 1, 8)   # 8-aligned -> clean (LANE, LANE) slice
    b2_off = w2_off + LANE
    w3_off = _round_up(b2_off + 1, 8)
    b3_off = w3_off + LANE
    rows = _round_up(b3_off + 1, 8)
    return w1_off, b1_off, w2_off, b2_off, w3_off, b3_off, rows


def pack_params(w1, b1, w2, b2, w3, b3):
    """Pack all layer params into one (rows, 128) f32 buffer (single DMA).

    w1: (nS, H), b1: (H,), w2: (H, H), b2: (H,), w3: (H, nA), b3: (nA,)
    Weights use the (in_features, out_features) convention (transposed vs.
    PyTorch), so the kernel's x @ W + b == PyTorch's x @ W.T + b.
    All segments are lane-padded with zeros to 128 lanes and row-padded with
    zeros to 128 rows (w2/w3) -> zero contribution downstream.
    """
    nS, H = w1.shape
    nA = w3.shape[1]
    assert H <= LANE and nA <= LANE and nS <= 8
    w1_off, b1_off, w2_off, b2_off, w3_off, b3_off, rows = _param_offsets(nS)

    p = jnp.zeros((rows, LANE), jnp.float32)
    p = p.at[w1_off:w1_off + nS, :H].set(w1.astype(jnp.float32))
    p = p.at[b1_off, :H].set(b1.astype(jnp.float32))
    p = p.at[w2_off:w2_off + H, :H].set(w2.astype(jnp.float32))
    p = p.at[b2_off, :H].set(b2.astype(jnp.float32))
    p = p.at[w3_off:w3_off + H, :nA].set(w3.astype(jnp.float32))
    p = p.at[b3_off, :nA].set(b3.astype(jnp.float32))
    return p


def _dqn_kernel(x_ref, p_ref, o_ref, *, state_size, matmul_dtype):
    nS = state_size
    w1_off, b1_off, w2_off, b2_off, w3_off, b3_off, _ = _param_offsets(nS)
    L = LANE

    x = x_ref[...]                                         # (tb, nS) f32

    # ---- fc1: K=nS (tiny) contraction on the VPU, not the MXU -------------
    h1 = p_ref[b1_off:b1_off + 1, :]                       # (1, L) bias row
    for k in range(nS):                                    # unrolled at trace time
        h1 = h1 + x[:, k:k + 1] * p_ref[w1_off + k:w1_off + k + 1, :]
    h1 = jnp.maximum(h1, 0.0)                              # (tb, L); lanes >=H are 0

    # ---- fc2: MXU (bf16 inputs by default, f32 accumulate) -----------------
    w2 = p_ref[w2_off:w2_off + L, :]                       # (L, L), 8-aligned slice
    b2 = p_ref[b2_off:b2_off + 1, :]                       # (1, L)
    h2 = jnp.dot(h1.astype(matmul_dtype), w2.astype(matmul_dtype),
                 preferred_element_type=jnp.float32) + b2
    h2 = jnp.maximum(h2, 0.0)                              # (tb, L)

    # ---- fc3: MXU; lanes >= nA of w3/b3 are zero -> q is zero there --------
    w3 = p_ref[w3_off:w3_off + L, :]                       # (L, L)
    b3 = p_ref[b3_off:b3_off + 1, :]                       # (1, L)
    q = jnp.dot(h2.astype(matmul_dtype), w3.astype(matmul_dtype),
                preferred_element_type=jnp.float32) + b3

    # Lane-dense (tb, 128) store: no in-kernel nA slice, no masked vst.
    o_ref[...] = q.astype(o_ref.dtype)


def dqn_forward_packed(x, params, *, state_size, action_size, tb=None,
                       matmul_dtype=jnp.bfloat16):
    """Forward pass with pre-packed params (preferred in a hot loop).

    Returns Q-values of shape (B, action_size), float32.
    """
    B = x.shape[0]
    nS, nA = state_size, action_size
    x = x.astype(jnp.float32)

    if tb is None:
        if B <= 512:
            # Single grid step: per-step overhead (~0.35 us) dwarfs the work,
            # so don't split tiny batches just to create v7x parallelism.
            tb = _round_up(B, 8)
        else:
            # Replay/training-scale batches: big tiles (multiple of 128 for the
            # v5e MXU row height), capped at 1024 rows, >= 2 grid steps so both
            # v7x TensorCores get work.
            tb = min(1024, _round_up(pl.cdiv(B, 2), 128))
    b_pad = _round_up(B, tb)
    if b_pad != B:
        x = jnp.pad(x, ((0, b_pad - B), (0, 0)))
    rows = params.shape[0]

    kernel = functools.partial(
        _dqn_kernel, state_size=nS, matmul_dtype=matmul_dtype)

    out = pl.pallas_call(
        kernel,
        out_shape=jax.ShapeDtypeStruct((b_pad, LANE), jnp.float32),
        grid=(b_pad // tb,),
        in_specs=[
            pl.BlockSpec((tb, nS), lambda i: (i, 0)),      # per-tile activations
            pl.BlockSpec((rows, LANE), lambda i: (0, 0)),  # params resident in VMEM
        ],
        out_specs=pl.BlockSpec((tb, LANE), lambda i: (i, 0)),  # lane-dense output
        compiler_params=pltpu.CompilerParams(
            dimension_semantics=("parallel",)),            # shard batch over TCs (v7x)
    )(x, params)

    return out[:B, :nA]


def dqn_forward(x, w1, b1, w2, b2, w3, b3, matmul_dtype=jnp.bfloat16):
    """Convenience wrapper matching the original (unpacked) signature.

    Keep this OFF the hot path: pack once with pack_params and call
    dqn_forward_packed in a loop instead.
    """
    nS, _ = w1.shape
    nA = w3.shape[1]
    params = pack_params(w1, b1, w2, b2, w3, b3)
    return dqn_forward_packed(
        x, params, state_size=nS, action_size=nA, matmul_dtype=matmul_dtype)


def init_params(key, state_size, action_size, hidden=64):
    """Deterministic init mimicking nn.Linear's U(-1/sqrt(fan_in), 1/sqrt(fan_in))."""
    ks = jax.random.split(key, 6)

    def lin(kw, kb, fan_in, fan_out):
        bound = 1.0 / jnp.sqrt(fan_in)
        w = jax.random.uniform(kw, (fan_in, fan_out), jnp.float32, -bound, bound)
        b = jax.random.uniform(kb, (fan_out,), jnp.float32, -bound, bound)
        return w, b

    w1, b1 = lin(ks[0], ks[1], state_size, hidden)
    w2, b2 = lin(ks[2], ks[3], hidden, hidden)
    w3, b3 = lin(ks[4], ks[5], hidden, action_size)
    return w1, b1, w2, b2, w3, b3


if __name__ == "__main__":
    # CartPole-v1: observation dim = 4, action dim = 2; batch matches the
    # module's replay batch_size = 64.
    state_size = 4
    action_size = 2
    hidden = 64
    batch = 64

    key = jax.random.PRNGKey(0)
    k_x, k_p = jax.random.split(key)

    x = jax.random.normal(k_x, (batch, state_size), dtype=jnp.float32)
    w1, b1, w2, b2, w3, b3 = init_params(k_p, state_size, action_size, hidden)

    # Pack once (hoisted out of the per-step path), then run the kernel.
    params = pack_params(w1, b1, w2, b2, w3, b3)

    # Pure-JAX reference (same math as the PyTorch module).
    h1 = jnp.maximum(x @ w1 + b1, 0.0)
    h2 = jnp.maximum(h1 @ w2 + b2, 0.0)
    q_ref = h2 @ w3 + b3

    # Default path: bf16 MXU inputs, f32 accumulate (v5e/v6e/v7x friendly).
    q_bf16 = dqn_forward_packed(
        x, params, state_size=state_size, action_size=action_size,
        matmul_dtype=jnp.bfloat16)
    q_bf16 = jax.block_until_ready(q_bf16)

    # Exact-verification path: full f32 matmuls.
    q_f32 = dqn_forward_packed(
        x, params, state_size=state_size, action_size=action_size,
        matmul_dtype=jnp.float32)
    q_f32 = jax.block_until_ready(q_f32)

    assert q_bf16.shape == (batch, action_size)
    assert q_f32.shape == (batch, action_size)
    assert jnp.allclose(q_f32, q_ref, atol=1e-5, rtol=1e-5)
    assert jnp.allclose(q_bf16, q_ref, atol=5e-2, rtol=5e-2)

    print("KERNEL_OK")
</pallas_src>

<mosaic_0001>
module attributes {stable_mosaic.version = 11 : i64} {
  func.func @_dqn_kernel(%arg0: i32, %arg1: memref<64x4xf32, #tpu.memory_space<vmem>>, %arg2: memref<280x128xf32, #tpu.memory_space<vmem>>, %arg3: memref<64x128xf32, #tpu.memory_space<vmem>>) attributes {dimension_semantics = [#tpu.dimension_semantics<parallel>], iteration_bounds = array<i64: 1>, scalar_prefetch = 0 : i64, scratch_operands = 0 : i64, tpu.core_type = #tpu.core_type<tc>, window_params = [{transform_indices = @transform_0, window_bounds = array<i64: 64, 4>}, {pipeline_mode = #tpu.pipeline_mode<synchronous>, transform_indices = @transform_1, window_bounds = array<i64: 280, 128>}, {transform_indices = @transform_2, window_bounds = array<i64: 64, 128>}]} {
    %c0 = arith.constant 0 : index
    %c0_0 = arith.constant 0 : index
    %0 = vector.load %arg1[%c0, %c0_0] : memref<64x4xf32, #tpu.memory_space<vmem>>, vector<64x4xf32>
    %c4 = arith.constant 4 : index
    %c0_1 = arith.constant 0 : index
    %1 = vector.load %arg2[%c4, %c0_1] : memref<280x128xf32, #tpu.memory_space<vmem>>, vector<1x128xf32>
    %2 = vector.extract_strided_slice %0 {offsets = [0, 0], sizes = [64, 1], strides = [1, 1]} : vector<64x4xf32> to vector<64x1xf32>
    %c0_2 = arith.constant 0 : index
    %c0_3 = arith.constant 0 : index
    %3 = vector.load %arg2[%c0_2, %c0_3] : memref<280x128xf32, #tpu.memory_space<vmem>>, vector<1x128xf32>
    %4 = vector.broadcast %2 : vector<64x1xf32> to vector<64x128xf32>
    %5 = vector.broadcast %3 : vector<1x128xf32> to vector<64x128xf32>
    %6 = arith.mulf %4, %5 : vector<64x128xf32>
    %7 = vector.broadcast %1 : vector<1x128xf32> to vector<64x128xf32>
    %8 = arith.addf %7, %6 : vector<64x128xf32>
    %9 = vector.extract_strided_slice %0 {offsets = [0, 1], sizes = [64, 1], strides = [1, 1]} : vector<64x4xf32> to vector<64x1xf32>
    %c1 = arith.constant 1 : index
    %c0_4 = arith.constant 0 : index
    %10 = vector.load %arg2[%c1, %c0_4] : memref<280x128xf32, #tpu.memory_space<vmem>>, vector<1x128xf32>
    %11 = vector.broadcast %9 : vector<64x1xf32> to vector<64x128xf32>
    %12 = vector.broadcast %10 : vector<1x128xf32> to vector<64x128xf32>
    %13 = arith.mulf %11, %12 : vector<64x128xf32>
    %14 = arith.addf %8, %13 : vector<64x128xf32>
    %15 = vector.extract_strided_slice %0 {offsets = [0, 2], sizes = [64, 1], strides = [1, 1]} : vector<64x4xf32> to vector<64x1xf32>
    %c2 = arith.constant 2 : index
    %c0_5 = arith.constant 0 : index
    %16 = vector.load %arg2[%c2, %c0_5] : memref<280x128xf32, #tpu.memory_space<vmem>>, vector<1x128xf32>
    %17 = vector.broadcast %15 : vector<64x1xf32> to vector<64x128xf32>
    %18 = vector.broadcast %16 : vector<1x128xf32> to vector<64x128xf32>
    %19 = arith.mulf %17, %18 : vector<64x128xf32>
    %20 = arith.addf %14, %19 : vector<64x128xf32>
    %21 = vector.extract_strided_slice %0 {offsets = [0, 3], sizes = [64, 1], strides = [1, 1]} : vector<64x4xf32> to vector<64x1xf32>
    %c3 = arith.constant 3 : index
    %c0_6 = arith.constant 0 : index
    %22 = vector.load %arg2[%c3, %c0_6] : memref<280x128xf32, #tpu.memory_space<vmem>>, vector<1x128xf32>
    %23 = vector.broadcast %21 : vector<64x1xf32> to vector<64x128xf32>
    %24 = vector.broadcast %22 : vector<1x128xf32> to vector<64x128xf32>
    %25 = arith.mulf %23, %24 : vector<64x128xf32>
    %26 = arith.addf %20, %25 : vector<64x128xf32>
    %cst = arith.constant 0.000000e+00 : f32
    %27 = vector.broadcast %cst : f32 to vector<64x128xf32>
    %28 = arith.maximumf %26, %27 : vector<64x128xf32>
    %c8 = arith.constant 8 : index
    %c0_7 = arith.constant 0 : index
    %29 = vector.load %arg2[%c8, %c0_7] : memref<280x128xf32, #tpu.memory_space<vmem>>, vector<128x128xf32>
    %c136 = arith.constant 136 : index
    %c0_8 = arith.constant 0 : index
    %30 = vector.load %arg2[%c136, %c0_8] : memref<280x128xf32, #tpu.memory_space<vmem>>, vector<1x128xf32>
    %31 = arith.truncf %28 : vector<64x128xf32> to vector<64x128xbf16>
    %32 = arith.truncf %29 : vector<128x128xf32> to vector<128x128xbf16>
    %cst_9 = arith.constant dense<0.000000e+00> : vector<64x128xf32>
    %33 = tpu.matmul %31, %32, %cst_9 {dimension_numbers = #tpu.dot_dimension_numbers<[1], [0], [0], [1], [0, 0, 1, 1], [], []>} : vector<64x128xbf16>, vector<128x128xbf16>, vector<64x128xf32> -> vector<64x128xf32>
    %34 = vector.broadcast %30 : vector<1x128xf32> to vector<64x128xf32>
    %35 = arith.addf %33, %34 : vector<64x128xf32>
    %cst_10 = arith.constant 0.000000e+00 : f32
    %36 = vector.broadcast %cst_10 : f32 to vector<64x128xf32>
    %37 = arith.maximumf %35, %36 : vector<64x128xf32>
    %c144 = arith.constant 144 : index
    %c0_11 = arith.constant 0 : index
    %38 = vector.load %arg2[%c144, %c0_11] : memref<280x128xf32, #tpu.memory_space<vmem>>, vector<128x128xf32>
    %c272 = arith.constant 272 : index
    %c0_12 = arith.constant 0 : index
    %39 = vector.load %arg2[%c272, %c0_12] : memref<280x128xf32, #tpu.memory_space<vmem>>, vector<1x128xf32>
    %40 = arith.truncf %37 : vector<64x128xf32> to vector<64x128xbf16>
    %41 = arith.truncf %38 : vector<128x128xf32> to vector<128x128xbf16>
    %cst_13 = arith.constant dense<0.000000e+00> : vector<64x128xf32>
    %42 = tpu.matmul %40, %41, %cst_13 {dimension_numbers = #tpu.dot_dimension_numbers<[1], [0], [0], [1], [0, 0, 1, 1], [], []>} : vector<64x128xbf16>, vector<128x128xbf16>, vector<64x128xf32> -> vector<64x128xf32>
    %43 = vector.broadcast %39 : vector<1x128xf32> to vector<64x128xf32>
    %44 = arith.addf %42, %43 : vector<64x128xf32>
    %c0_14 = arith.constant 0 : index
    %c0_15 = arith.constant 0 : index
    %45 = vector.load %arg3[%c0_14, %c0_15] : memref<64x128xf32, #tpu.memory_space<vmem>>, vector<64x128xf32>
    tpu.vector_store %arg3[%c0_14, %c0_15], %44 {strides = array<i32>} : memref<64x128xf32, #tpu.memory_space<vmem>>, vector<64x128xf32>,
    return
  }
  func.func @transform_0(%arg0: i32) -> (i32, i32) {
    %c0_i32 = arith.constant 0 : i32
    %c0_i32_0 = arith.constant 0 : i32
    return %arg0, %c0_i32 : i32, i32
  }
  func.func @transform_1(%arg0: i32) -> (i32, i32) {
    %c0_i32 = arith.constant 0 : i32
    %c0_i32_0 = arith.constant 0 : i32
    %c0_i32_1 = arith.constant 0 : i32
    return %c0_i32, %c0_i32_0 : i32, i32
  }
  func.func @transform_2(%arg0: i32) -> (i32, i32) {
    %c0_i32 = arith.constant 0 : i32
    %c0_i32_0 = arith.constant 0 : i32
    return %arg0, %c0_i32 : i32, i32
  }
}

</mosaic_0001>

<bundles_post_ra>
// kernel: tpu_custom_call.1
= control target key start
LH: loop header
LB: loop body
LE: loop exit
PB: predicated region body
PF: predicated region fallthrough
CT: control target
= control target key end

     0   :  { %7 = vsyncpa [#allocation3], 0  ;;  %s637_s0 = inlined_call_operand.vmem [shape: f32[64,4], index: 0, kind: input, shape index: {}]   ;;  %s638_s1 = inlined_call_operand.hbm [shape: f32[280,128], index: 1, kind: input, shape index: {}]   ;;  %s639_s2 = inlined_call_operand.hbm [shape: f32[64,128], index: 2, kind: output, shape index: {}]  }
   0x1   :  { %8 = vsyncpa [#allocation4], 0  ;;  %s15_s11 = sshll.u32 %s638_s1, 4  ;;  %s517_s12 = smov [#allocation2]   ;;  %s16_s11 = int_to_ptr.hbm [resolvable:$true] %s15_s11 }
   0x2   :  { %s17_s13 = sshll.u32 %s517_s12, 4  ;;  %s518_s14 = smov 128   ;;  %s18_s13 = int_to_ptr.vmem [resolvable:$true] %s17_s13 }
   0x3   :  { %s519_s15 = smov 8  }
   0x4   :  { %23 = dma.hbm_to_vmem [thread:$0]  %s16_s11, 4480, %s18_s13, [#allocation3], %s518_s14, %s518_s14, %s519_s15  }
   0x5   :  { %513 = dma.done.wait [#allocation3], 4480  }
   0x6   :  { %514 = vsyncadd [#allocation3], 4294962816  ;;  %v520_v0 = vmov 1   ;;  %v521_v1 = vmov 0   ;;  %v522_v2 = vmov 2   ;;  %v32_v3 = vld [vmem:[%s637_s0 + $0x20] sm:$0xff] }
   0x7   :  { %432 = vset.pattern.permute.xlu1 %v520_v0  ;;  %431 = vset.pattern.permute.xlu0 %v521_v1  ;;  %v33_v4 = vld [vmem:[%s637_s0 + $0x28] sm:$0xff]  ;;  %v523_v6 = vmov 3   ;;  %v28_v7 = vld [vmem:[%s637_s0] sm:$0xff]  ;;  %v34_v8 = vld [vmem:[%s637_s0 + $0x30] sm:$0xff]  ;;  %s394_s6 = sshll.u32 %s639_s2, 4  ;;  %s395_s6 = int_to_ptr.hbm [resolvable:$true] %s394_s6 }
   0x8   :  { %433 = vset.pattern.permute.xlu2 %v522_v2  ;;  %114 = vperm.xlu1 %432, %v32_v3   ;;  %v29_v5 = vld [vmem:[%s637_s0 + $0x8] sm:$0xff]  ;;  %v35_v9 = vld [vmem:[%s637_s0 + $0x38] sm:$0xff]  ;;  %v30_v10 = vld [vmem:[%s637_s0 + $0x10] sm:$0xff] }
   0x9   :  { %60 = vperm.xlu0 %431, %v32_v3   ;;  %164 = vperm.xlu2 %433, %v32_v3   ;;  %v31_v11 = vld [vmem:[%s637_s0 + $0x18] sm:$0xff]  ;;  %v269_v14 = vld [vmem:[#allocation2 + $0x80] sm:$0xff]  ;;  %v266_v16 = vld [vmem:[#allocation2 + $0x68] sm:$0xff]  ;;  %s524_s0 = smov [#allocation5]  }
   0xa   :  { %v268_v13 = vld [vmem:[#allocation2 + $0x78] sm:$0xff]  ;;  %v267_v17 = vld [vmem:[#allocation2 + $0x70] sm:$0xff]  ;;  %v265_v21 = vld [vmem:[#allocation2 + $0x60] sm:$0xff]  ;;  %s392_s3 = sshll.u32 %s524_s0, 4  ;;  %s393_s3 = int_to_ptr.vmem [resolvable:$true] %s392_s3 }
   0xb   :  { %v282_v15 = vpack.c.bf16 %v269_v14, %v268_v13  ;;  %v281_v18 = vpack.c.bf16 %v267_v17, %v266_v16  ;;  %v264_v20 = vld [vmem:[#allocation2 + $0x58] sm:$0xff]  ;;  %v262_v23 = vld [vmem:[#allocation2 + $0x48] sm:$0xff]  ;;  %v263_v24 = vld [vmem:[#allocation2 + $0x50] sm:$0xff] }
   0xc   :  { %v280_v22 = vpack.c.bf16 %v265_v21, %v264_v20  ;;  %v279_v25 = vpack.c.bf16 %v263_v24, %v262_v23  ;;  %v260_v26 = vld [vmem:[#allocation2 + $0x38] sm:$0xff]  ;;  %v261_v27 = vld [vmem:[#allocation2 + $0x40] sm:$0xff]  ;;  %v258_v30 = vld [vmem:[#allocation2 + $0x28] sm:$0xff] }
   0xd   :  { %407 = vmatpush.bf16.msra.mxu2 %v282_v15  ;;  %284 = vmatpush.bf16.msra.mxu0 %v282_v15  ;;  %v278_v28 = vpack.c.bf16 %v261_v27, %v260_v26  ;;  %v259_v31 = vld [vmem:[#allocation2 + $0x30] sm:$0xff]  ;;  %v256_v35 = vld [vmem:[#allocation2 + $0x18] sm:$0xff]  ;;  %v257_v36 = vld [vmem:[#allocation2 + $0x20] sm:$0xff] }
   0xe   :  { %v277_v32 = vpack.c.bf16 %v259_v31, %v258_v30  ;;  %v276_v37 = vpack.c.bf16 %v257_v36, %v256_v35  ;;  %v254_v39 = vld [vmem:[#allocation2 + $0x8] sm:$0xff]  ;;  %v255_v40 = vld [vmem:[#allocation2 + $0x10] sm:$0xff]  ;;  %v580_v47 = vld [vmem:[#allocation2] ss:$0 sm:$0xff] }
   0xf   :  { %v275_v41 = vpack.c.bf16 %v255_v40, %v254_v39  ;;  %v583_v49 = vld [vmem:[#allocation2 + $0x4] ss:$0 sm:$0xff]  ;;  %v586_v52 = vld [vmem:[#allocation2 + $0x1] ss:$0 sm:$0xff]  ;;  %v589_v56 = vld [vmem:[#allocation2 + $0x2] ss:$0 sm:$0xff] }
  0x10   :  { %118 = vperm.xlu1 %432, %v33_v4   ;;  %v593_v59 = vld [vmem:[#allocation2 + $0x3] ss:$0 sm:$0xff] }
  0x11   :  { %65 = vperm.xlu0 %431, %v33_v4   ;;  %168 = vperm.xlu2 %433, %v33_v4  }
  0x12   :  { %408 = vmatpush.bf16.msra.mxu2 %v281_v18  ;;  %285 = vmatpush.bf16.msra.mxu0 %v281_v18 }
  0x16   :  { %409 = vmatpush.bf16.msra.mxu2 %v280_v22  ;;  %286 = vmatpush.bf16.msra.mxu0 %v280_v22 }
  0x18   :  { %434 = vset.pattern.permute.xlu1 %v523_v6 }
  0x19   :  { %438 = vset.pattern.permute.xlu0 %v520_v0  ;;  %218 = vperm.xlu1 %434, %v33_v4  }
  0x1a   :  { %102 = vperm.xlu0 %438, %v29_v5   ;;  %435 = vset.pattern.permute.xlu2 %v521_v1 }
  0x1b   :  { %40 = vperm.xlu2 %435, %v28_v7   ;;  %410 = vmatpush.bf16.msra.mxu2 %v279_v25 }
  0x1c   :  { %287 = vmatpush.bf16.msra.mxu0 %v279_v25 }
  0x1f   :  { %411 = vmatpush.bf16.msra.mxu2 %v278_v28 }
  0x20   :  { %288 = vmatpush.bf16.msra.mxu0 %v278_v28 }
  0x21   :  { %436 = vset.pattern.permute.xlu1 %v521_v1 }
  0x22   :  { %122 = vperm.xlu0 %438, %v34_v8   ;;  %45 = vperm.xlu1 %436, %v29_v5  }
  0x23   :  { %437 = vset.pattern.permute.xlu2 %v520_v0  ;;  %412 = vmatpush.bf16.msra.mxu2 %v277_v32 }
  0x24   :  { %98 = vperm.xlu2 %437, %v28_v7   ;;  %289 = vmatpush.bf16.msra.mxu0 %v277_v32 }
  0x27   :  { %413 = vmatpush.bf16.msra.mxu2 %v276_v37 }
  0x28   :  { %290 = vmatpush.bf16.msra.mxu0 %v276_v37 }
  0x2a   :  { %442 = vset.pattern.permute.xlu0 %v523_v6  ;;  %70 = vperm.xlu1 %436, %v34_v8  }
  0x2b   :  { %214 = vperm.xlu0 %442, %v32_v3   ;;  %414 = vmatpush.bf16.msra.mxu2 %v275_v41 }
  0x2c   :  { %439 = vset.pattern.permute.xlu2 %v521_v1  ;;  %291 = vmatpush.bf16.msra.mxu0 %v275_v41 }
  0x2d   :  { %75 = vperm.xlu2 %439, %v35_v9  }
  0x32   :  { %440 = vset.pattern.permute.xlu1 %v522_v2 }
  0x33   :  { %202 = vperm.xlu0 %442, %v29_v5   ;;  %148 = vperm.xlu1 %440, %v28_v7  }
  0x35   :  { %441 = vset.pattern.permute.xlu2 %v522_v2 }
  0x36   :  { %152 = vperm.xlu2 %441, %v29_v5  }
  0x3b   :  { %449 = vset.pattern.permute.xlu0 %v521_v1  ;;  %443 = vset.pattern.permute.xlu1 %v520_v0 }
  0x3c   :  { %50 = vperm.xlu0 %449, %v30_v10   ;;  %126 = vperm.xlu1 %443, %v35_v9  }
  0x3e   :  { %444 = vset.pattern.permute.xlu2 %v523_v6 }
  0x3f   :  { %198 = vperm.xlu2 %444, %v28_v7  }
  0x44   :  { %454 = vset.pattern.permute.xlu0 %v522_v2  ;;  %445 = vset.pattern.permute.xlu1 %v522_v2 }
  0x45   :  { %160 = vperm.xlu0 %454, %v31_v11   ;;  %172 = vperm.xlu1 %445, %v34_v8  }
  0x47   :  { %446 = vset.pattern.permute.xlu2 %v522_v2 }
  0x48   :  { %176 = vperm.xlu2 %446, %v35_v9  }
  0x4d   :  { %457 = vset.pattern.permute.xlu0 %v523_v6  ;;  %447 = vset.pattern.permute.xlu1 %v523_v6 }
  0x4e   :  { %222 = vperm.xlu1 %447, %v34_v8  }
  0x50   :  { %448 = vset.pattern.permute.xlu2 %v523_v6 }
  0x51   :  { %226 = vperm.xlu2 %448, %v35_v9  }
  0x56   :  { %450 = vset.pattern.permute.xlu1 %v521_v1 }
  0x57   :  { %55 = vperm.xlu1 %450, %v31_v11  }
  0x59   :  { %451 = vset.pattern.permute.xlu2 %v520_v0 }
  0x5a   :  { %106 = vperm.xlu2 %451, %v30_v10  }
  0x5f   :  { %452 = vset.pattern.permute.xlu1 %v520_v0 }
  0x60   :  { %110 = vperm.xlu1 %452, %v31_v11  }
  0x62   :  { %453 = vset.pattern.permute.xlu2 %v522_v2 }
  0x63   :  { %v576_v12 = vpop.permute.xlu2 %164  ;;  %156 = vperm.xlu2 %453, %v30_v10  }
  0x64   :  { %v184_v3 = vmul.f32 %v589_v56, %v576_v12 }
  0x68   :  { %455 = vset.pattern.permute.xlu1 %v523_v6 }
  0x69   :  { %206 = vperm.xlu1 %455, %v30_v10  }
  0x6b   :  { %v169_v19 = vpop.permute.xlu2 %168  ;;  %456 = vset.pattern.permute.xlu2 %v523_v6 }
  0x6c   :  { %210 = vperm.xlu2 %456, %v31_v11   ;;  %v185_v62 = vmul.f32 %v589_v56, %v169_v19 }
  0x75   :  { %v41_v29 = vpop.permute.xlu2 %40 }
  0x76   :  { %v79_v10 = vmul.f32 %v580_v47, %v41_v29 }
  0x78   :  { %v88_v17 = vadd.f32 %v583_v49, %v79_v10 }
  0x7a   :  { %v115_v33 = vpop.permute.xlu1 %114 }
  0x7b   :  { %v61_v34 = vpop.permute.xlu0 %60  ;;  %v134_v60 = vmul.f32 %v586_v52, %v115_v33 }
  0x7c   :  { %v83_v50 = vmul.f32 %v580_v47, %v61_v34 }
  0x7e   :  { %v99_v38 = vpop.permute.xlu2 %98  ;;  %v92_v57 = vadd.f32 %v583_v49, %v83_v50 }
  0x7f   :  { %v130_v12 = vmul.f32 %v586_v52, %v99_v38 }
  0x80   :  { %v142_v63 = vadd.f32 %v134_v60, %v92_v57 }
  0x81   :  { %v138_v25 = vadd.f32 %v130_v12, %v88_v17 }
  0x82   :  { %v119_v42 = vpop.permute.xlu1 %118  ;;  %v192_v8 = vadd.f32 %v184_v3, %v142_v63 }
  0x83   :  { %v66_v43 = vpop.permute.xlu0 %65  ;;  %v135_v58 = vmul.f32 %v586_v52, %v119_v42 }
  0x84   :  { %v84_v48 = vmul.f32 %v580_v47, %v66_v43 }
  0x86   :  { %v93_v53 = vadd.f32 %v583_v49, %v84_v48 }
  0x87   :  { %v76_v44 = vpop.permute.xlu2 %75 }
  0x88   :  { %v143_v61 = vadd.f32 %v135_v58, %v93_v53  ;;  %v86_v40 = vmul.f32 %v580_v47, %v76_v44 }
  0x8a   :  { %v193_v4 = vadd.f32 %v185_v62, %v143_v61 }
  0x8b   :  { %v219_v45 = vpop.permute.xlu1 %218 }
  0x8c   :  { %v103_v46 = vpop.permute.xlu0 %102  ;;  %v235_v0 = vmul.f32 %v593_v59, %v219_v45  ;;  %v95_v45 = vadd.f32 %v583_v49, %v86_v40  ;;  %v323_v40 = vld [vmem:[#allocation2 + $0xa0] sm:$0xff] }
  0x8d   :  { %v131_v11 = vmul.f32 %v586_v52, %v103_v46 }
  0x8e   :  { %v243_v7 = vadd.f32 %v235_v0, %v193_v4 }
  0x90   :  { %v153_v51 = vpop.permute.xlu2 %152  ;;  %v251_v15 = vmax.f32 %v243_v7, 0.0  ;;  %v333_v7 = vld [vmem:[#allocation2 + $0xf0] sm:$0xff] }
  0x91   :  { %v181_v19 = vmul.f32 %v589_v56, %v153_v51 }
  0x94   :  { %v123_v54 = vpop.permute.xlu0 %122  ;;  %v46_v55 = vpop.permute.xlu1 %45 }
  0x95   :  { %v80_v2 = vmul.f32 %v580_v47, %v46_v55  ;;  %v136_v55 = vmul.f32 %v586_v52, %v123_v54  ;;  %v336_v54 = vld [vmem:[#allocation2 + $0x108] sm:$0xff] }
  0x97   :  { %v89_v13 = vadd.f32 %v583_v49, %v80_v2 }
  0x99   :  { %v199_v1 = vpop.permute.xlu2 %198  ;;  %v139_v18 = vadd.f32 %v131_v11, %v89_v13  ;;  %v334_v11 = vld [vmem:[#allocation2 + $0xf8] sm:$0xff] }
  0x9a   :  { %v230_v27 = vmul.f32 %v593_v59, %v199_v1 }
  0x9b   :  { %v189_v26 = vadd.f32 %v181_v19, %v139_v18 }
  0x9c   :  { %v71_v6 = vpop.permute.xlu1 %70 }
  0x9d   :  { %v215_v5 = vpop.permute.xlu0 %214  ;;  %v85_v46 = vmul.f32 %v580_v47, %v71_v6  ;;  %v335_v6 = vld [vmem:[#allocation2 + $0x100] sm:$0xff] }
  0x9e   :  { %v234_v9 = vmul.f32 %v593_v59, %v215_v5  ;;  %v349_v10 = vpack.c.bf16 %v336_v54, %v335_v6 }
  0x9f   :  { %v94_v57 = vadd.f32 %v583_v49, %v85_v46 }
  0xa0   :  { %v242_v14 = vadd.f32 %v234_v9, %v192_v8  ;;  %415 = vmatpush.bf16.msra.mxu3 %v349_v10  ;;  %351 = vmatpush.bf16.msra.mxu1 %v349_v10 }
  0xa1   :  { %v144_v63 = vadd.f32 %v136_v55, %v94_v57 }
  0xa2   :  { %v250_v16 = vmax.f32 %v242_v14, 0.0  ;;  %v177_v20 = vpop.permute.xlu2 %176  ;;  %v348_v14 = vpack.c.bf16 %v334_v11, %v333_v7 }
  0xa3   :  { %v187_v51 = vmul.f32 %v589_v56, %v177_v20  ;;  %v329_v20 = vld [vmem:[#allocation2 + $0xd0] sm:$0xff] }
  0xa4   :  { %v273_v21 = vpack.c.bf16 %v251_v15, %v250_v16  ;;  %v331_v15 = vld [vmem:[#allocation2 + $0xe0] sm:$0xff]  ;;  %v332_v16 = vld [vmem:[#allocation2 + $0xe8] sm:$0xff]  ;;  %416 = vmatpush.bf16.msra.mxu3 %v348_v14  ;;  %352 = vmatpush.bf16.msra.mxu1 %v348_v14 }
  0xa5   :  { %v203_v22 = vpop.permute.xlu0 %202  ;;  %v149_v24 = vpop.permute.xlu1 %148  ;;  %v347_v18 = vpack.c.bf16 %v332_v16, %v331_v15  ;;  %v464_v16 = vld [vmem:[#allocation2 + $0x110] ss:$0 sm:$0xff] }
  0xa6   :  { %v231_v23 = vmul.f32 %v593_v59, %v203_v22  ;;  %302 = vmatmul.bf16.vlgmr.msra.gmra.mxu2 %v273_v21  ;;  %v180_v28 = vmul.f32 %v589_v56, %v149_v24  ;;  %v330_v21 = vld [vmem:[#allocation2 + $0xd8] sm:$0xff] }
  0xa7   :  { %v346_v22 = vpack.c.bf16 %v330_v21, %v329_v20 }
  0xa8   :  { %v239_v29 = vadd.f32 %v231_v23, %v189_v26  ;;  %v188_v30 = vadd.f32 %v180_v28, %v138_v25  ;;  %417 = vmatpush.bf16.msra.mxu3 %v347_v18  ;;  %353 = vmatpush.bf16.msra.mxu1 %v347_v18 }
  0xaa   :  { %v238_v31 = vadd.f32 %v230_v27, %v188_v30  ;;  %v247_v32 = vmax.f32 %v239_v29, 0.0 }
  0xab   :  { %v227_v34 = vpop.permute.xlu2 %226 }
  0xac   :  { %v246_v33 = vmax.f32 %v238_v31, 0.0  ;;  %v237_v44 = vmul.f32 %v593_v59, %v227_v34  ;;  %418 = vmatpush.bf16.msra.mxu3 %v346_v22  ;;  %354 = vmatpush.bf16.msra.mxu1 %v346_v22 }
  0xae   :  { %v51_v35 = vpop.permute.xlu0 %50  ;;  %v127_v36 = vpop.permute.xlu1 %126  ;;  %v271_v37 = vpack.c.bf16 %v247_v32, %v246_v33 }
  0xaf   :  { %v81_v38 = vmul.f32 %v580_v47, %v51_v35  ;;  %v137_v42 = vmul.f32 %v586_v52, %v127_v36  ;;  %v327_v36 = vld [vmem:[#allocation2 + $0xc0] sm:$0xff] }
  0xb0   :  { %292 = vmatmul.bf16.vlgmr.msra.gmra.mxu0 %v271_v37  ;;  %v328_v37 = vld [vmem:[#allocation2 + $0xc8] sm:$0xff] }
  0xb1   :  { %v90_v39 = vadd.f32 %v583_v49, %v81_v38  ;;  %v145_v53 = vadd.f32 %v137_v42, %v95_v45  ;;  %v326_v38 = vld [vmem:[#allocation2 + $0xb8] sm:$0xff] }
  0xb3   :  { %v195_v58 = vadd.f32 %v187_v51, %v145_v53 }
  0xb4   :  { %v107_v41 = vpop.permute.xlu2 %106 }
  0xb5   :  { %v132_v43 = vmul.f32 %v586_v52, %v107_v41  ;;  %v245_v2 = vadd.f32 %v237_v44, %v195_v58  ;;  %v324_v41 = vld [vmem:[#allocation2 + $0xa8] sm:$0xff] }
  0xb6   :  { %v343_v42 = vpack.c.bf16 %v324_v41, %v323_v40 }
  0xb7   :  { %v173_v48 = vpop.permute.xlu1 %172  ;;  %v140_v50 = vadd.f32 %v132_v43, %v90_v39  ;;  %v253_v8 = vmax.f32 %v245_v2, 0.0  ;;  %v161_v23 = vpop.permute.xlu0 %160  ;;  %v322_v43 = vld [vmem:[#allocation2 + $0x98] sm:$0xff] }
  0xb8   :  { %v186_v60 = vmul.f32 %v589_v56, %v173_v48  ;;  %v183_v27 = vmul.f32 %v589_v56, %v161_v23  ;;  %v463_v48 = vld [vmem:[#allocation2 + $0x88] ss:$0 sm:$0xff] }
  0xba   :  { %v194_v3 = vadd.f32 %v186_v60, %v144_v63 }
  0xbd   :  { %v157_v61 = vpop.permute.xlu2 %156 }
  0xbe   :  { %v182_v62 = vmul.f32 %v589_v56, %v157_v61  ;;  %v325_v56 = vld [vmem:[#allocation2 + $0xb0] sm:$0xff] }
  0xbf   :  { %v344_v39 = vpack.c.bf16 %v326_v38, %v325_v56 }
  0xc0   :  { %v223_v0 = vpop.permute.xlu1 %222  ;;  %v190_v1 = vadd.f32 %v182_v62, %v140_v50 }
  0xc1   :  { %v236_v4 = vmul.f32 %v593_v59, %v223_v0 }
  0xc3   :  { %v244_v5 = vadd.f32 %v236_v4, %v194_v3 }
  0xc5   :  { %v252_v9 = vmax.f32 %v244_v5, 0.0 }
  0xc6   :  { %v211_v25 = vpop.permute.xlu2 %210 }
  0xc7   :  { %v274_v13 = vpack.c.bf16 %v253_v8, %v252_v9  ;;  %v233_v28 = vmul.f32 %v593_v59, %v211_v25 }
  0xc9   :  { %v56_v17 = vpop.permute.xlu1 %55  ;;  %307 = vmatmul.bf16.gmra.mxu2 %v274_v13 }
  0xca   :  { %v82_v12 = vmul.f32 %v580_v47, %v56_v17 }
  0xcc   :  { %v91_v19 = vadd.f32 %v583_v49, %v82_v12 }
  0xd2   :  { %v111_v24 = vpop.permute.xlu1 %110 }
  0xd3   :  { %v133_v26 = vmul.f32 %v586_v52, %v111_v24  ;;  %v345_v52 = vpack.c.bf16 %v328_v37, %v327_v36 }
  0xd5   :  { %v141_v47 = vadd.f32 %v133_v26, %v91_v19  ;;  %419 = vmatpush.bf16.msra.mxu3 %v345_v52  ;;  %355 = vmatpush.bf16.msra.mxu1 %v345_v52 }
  0xd7   :  { %v191_v29 = vadd.f32 %v183_v27, %v141_v47 }
  0xd9   :  { %v241_v30 = vadd.f32 %v233_v28, %v191_v29  ;;  %420 = vmatpush.bf16.msra.mxu3 %v344_v39  ;;  %356 = vmatpush.bf16.msra.mxu1 %v344_v39 }
  0xdb   :  { %v207_v49 = vpop.permute.xlu1 %206  ;;  %v249_v33 = vmax.f32 %v241_v30, 0.0 }
  0xdc   :  { %v232_v31 = vmul.f32 %v593_v59, %v207_v49  ;;  %v321_v59 = vld [vmem:[#allocation2 + $0x90] sm:$0xff] }
  0xdd   :  { %421 = vmatpush.bf16.msra.mxu3 %v343_v42  ;;  %357 = vmatpush.bf16.msra.mxu1 %v343_v42  ;;  %v342_v45 = vpack.c.bf16 %v322_v43, %v321_v59 }
  0xde   :  { %v240_v32 = vadd.f32 %v232_v31, %v190_v1 }
  0xe0   :  { %v248_v34 = vmax.f32 %v240_v32, 0.0 }
  0xe1   :  { %422 = vmatpush.bf16.msra.mxu3 %v342_v45  ;;  %358 = vmatpush.bf16.msra.mxu1 %v342_v45 }
  0xe2   :  { %v272_v35 = vpack.c.bf16 %v249_v33, %v248_v34 }
  0xe4   :  { %297 = vmatmul.bf16.gmra.mxu0 %v272_v35 }
 0x129   :  { %v303_v46 = vpop.f32.mrf.mxu2 }
 0x12a   :  { %v304_v51 = vadd.f32 %v463_v48, %v303_v46 }
 0x12c   :  { %v317_v57 = vmax.f32 %v304_v51, 0.0 }
 0x12d   :  { %v293_v50 = vpop.f32.mrf.mxu0 }
 0x12e   :  { %v294_v44 = vadd.f32 %v463_v48, %v293_v50 }
 0x130   :  { %v313_v63 = vmax.f32 %v294_v44, 0.0 }
 0x131   :  { %v305_v53 = vpop.f32.mrf.mxu2 }
 0x132   :  { %v306_v55 = vadd.f32 %v463_v48, %v305_v53 }
 0x134   :  { %v318_v58 = vmax.f32 %v306_v55, 0.0 }
 0x135   :  { %v295_v60 = vpop.f32.mrf.mxu0 }
 0x136   :  { %v340_v61 = vpack.c.bf16 %v318_v58, %v317_v57  ;;  %v296_v62 = vadd.f32 %v463_v48, %v295_v60 }
 0x138   :  { %369 = vmatmul.bf16.vlgmr.msra.gmra.mxu3 %v340_v61  ;;  %v314_v0 = vmax.f32 %v296_v62, 0.0 }
 0x13a   :  { %v338_v1 = vpack.c.bf16 %v314_v0, %v313_v63 }
 0x13c   :  { %359 = vmatmul.bf16.vlgmr.msra.gmra.mxu1 %v338_v1 }
 0x14c   :  { %v308_v2 = vpop.f32.mrf.mxu2 }
 0x14d   :  { %v309_v3 = vadd.f32 %v463_v48, %v308_v2 }
 0x14f   :  { %v319_v6 = vmax.f32 %v309_v3, 0.0 }
 0x154   :  { %v310_v4 = vpop.f32.mrf.mxu2 }
 0x155   :  { %v311_v5 = vadd.f32 %v463_v48, %v310_v4 }
 0x157   :  { %v320_v54 = vmax.f32 %v311_v5, 0.0 }
 0x159   :  { %v341_v7 = vpack.c.bf16 %v320_v54, %v319_v6 }
 0x15b   :  { %374 = vmatmul.bf16.gmra.mxu3 %v341_v7 }
 0x161   :  { %v298_v8 = vpop.f32.mrf.mxu0 }
 0x162   :  { %v299_v9 = vadd.f32 %v463_v48, %v298_v8 }
 0x164   :  { %v315_v13 = vmax.f32 %v299_v9, 0.0 }
 0x169   :  { %v300_v10 = vpop.f32.mrf.mxu0 }
 0x16a   :  { %v301_v11 = vadd.f32 %v463_v48, %v300_v10 }
 0x16c   :  { %v316_v14 = vmax.f32 %v301_v11, 0.0 }
 0x16e   :  { %v339_v15 = vpack.c.bf16 %v316_v14, %v315_v13 }
 0x170   :  { %364 = vmatmul.bf16.gmra.mxu1 %v339_v15 }
 0x1b9   :  { %v360_v17 = vpop.f32.mrf.mxu1 }
 0x1ba   :  { %v361_v12 = vadd.f32 %v464_v16, %v360_v17 }
 0x1bb   :  { %v370_v18 = vpop.f32.mrf.mxu3 }
 0x1bc   :  { %v371_v19 = vadd.f32 %v464_v16, %v370_v18  ;;  %380 = vst [vmem:[#allocation5] sm:$0xff] %v361_v12 }
 0x1be   :  { %384 = vst [vmem:[#allocation5 + $0x20] sm:$0xff] %v371_v19 }
 0x1c1   :  { %v362_v20 = vpop.f32.mrf.mxu1 }
 0x1c2   :  { %v363_v21 = vadd.f32 %v464_v16, %v362_v20 }
 0x1c3   :  { %v372_v22 = vpop.f32.mrf.mxu3 }
 0x1c4   :  { %v373_v23 = vadd.f32 %v464_v16, %v372_v22  ;;  %381 = vst [vmem:[#allocation5 + $0x8] sm:$0xff] %v363_v21 }
 0x1c6   :  { %385 = vst [vmem:[#allocation5 + $0x28] sm:$0xff] %v373_v23 }
 0x1de   :  { %v375_v24 = vpop.f32.mrf.mxu3 }
 0x1df   :  { %v376_v25 = vadd.f32 %v464_v16, %v375_v24 }
 0x1e1   :  { %386 = vst [vmem:[#allocation5 + $0x30] sm:$0xff] %v376_v25 }
 0x1e6   :  { %v377_v26 = vpop.f32.mrf.mxu3 }
 0x1e7   :  { %v378_v27 = vadd.f32 %v464_v16, %v377_v26 }
 0x1e9   :  { %387 = vst [vmem:[#allocation5 + $0x38] sm:$0xff] %v378_v27 }
 0x1ed   :  { %v365_v47 = vpop.f32.mrf.mxu1 }
 0x1ee   :  { %v366_v28 = vadd.f32 %v464_v16, %v365_v47 }
 0x1f0   :  { %382 = vst [vmem:[#allocation5 + $0x10] sm:$0xff] %v366_v28 }
 0x1f5   :  { %v367_v29 = vpop.f32.mrf.mxu1 }
 0x1f6   :  { %v368_v30 = vadd.f32 %v464_v16, %v367_v29 }
 0x1f8   :  { %383 = vst [vmem:[#allocation5 + $0x18] sm:$0xff] %v368_v30 }
 0x1f9   :  { %400 = dma.vmem_to_hbm [thread:$0]  %s393_s3, 1024, %s395_s6, [#allocation4], %s518_s14, %s518_s14, %s519_s15  }
 0x1fa   :  { %515 = dma.done.wait [#allocation4], 1024  }
 0x1fb   :  { %516 = vsyncadd [#allocation4], 4294966272 }
 0x1fc   :  { %405 = vsyncpa [#allocation3], 1 }
 0x1fd   :  { %406 = vsyncpa [#allocation4], 1 }

</bundles_post_ra>
